<compile_context>
chip_gen: v7x
topology: tpu7x:2x2x1
jax: 0.10.0
libtpu: 0.0.40
codegen_flags: <defaults>
</compile_context>

<pallas_src>
import math

import jax
import jax.numpy as jnp
from jax.experimental import pallas as pl
from jax.experimental.pallas import tpu as pltpu


# ----------------------------- kernel ----------------------------------------


def _outer_kernel(y_col_ref, plane_ref, o_ref):
    """out[m, p] = y[m] * plane[p] for one (bm, bp) tile.

    (bm, 1) * (1, bp) -> (bm, bp): a single VPU broadcast-multiply followed by
    a lane-dense store; HBM writeback is the binding unit.
    """
    o_ref[...] = y_col_ref[...] * plane_ref[...]


# ----------------------------- glue / setup ----------------------------------


def _make_profile(size: int) -> jnp.ndarray:
    """1-D normalized sinusoid, exactly matching the torch code (O(size) setup)."""
    a = math.pi * (0 - 0.5)          # stationary_points(0)
    b = math.pi * (2 - 0.5)          # stationary_points(2)
    x = jnp.linspace(a, b, size, dtype=jnp.float32)   # endpoint=True, like torch
    y = jnp.sin(x)
    y = y - jnp.min(y)
    y = y / jnp.max(y)
    return y


_VMEM_BUDGET = 10 * 1024 * 1024   # stay under v5e's 16 MiB default scoped VMEM


def _divisors(n: int):
    return [d for d in range(1, n + 1) if n % d == 0]


def _choose_tiles(size: int, plane_len: int):
    """Pick (bm, bp) tiles for the (size, plane_len) lane-dense output.

    bm: divides `size`, multiple of 8 (or == size)        -> sublane aligned
    bp: divides `plane_len`, multiple of 128 (or == plane_len) -> unmasked vst
    Among tile pairs whose double-buffered working set fits the VMEM budget,
    prefer >= 2 grid steps (megacore), then the largest tile, then the widest
    lane extent.
    """
    bm_cands = [d for d in _divisors(size) if d % 8 == 0 or d == size]
    bp_cands = [d for d in _divisors(plane_len) if d % 128 == 0 or d == plane_len]

    def need(bm, bp):
        # double-buffered output tile + double-buffered inputs (y column, plane row)
        return 2 * 4 * (bm * bp + bm + bp)

    pairs = [(bm, bp) for bp in bp_cands for bm in bm_cands]
    fitting = [p for p in pairs if need(*p) <= _VMEM_BUDGET]
    if fitting:
        def score(p):
            bm, bp = p
            grid_len = (size // bm) * (plane_len // bp)
            return (grid_len >= 2, bm * bp, bp)
        bm, bp = max(fitting, key=score)
    else:
        # Degenerate (enormous plane): smallest tile, raise vmem limit below.
        bm, bp = min(pairs, key=lambda p: need(*p))
    return bm, bp, need(bm, bp)


def _compiler_params(vmem_need_bytes: int) -> pltpu.CompilerParams:
    kwargs = dict(dimension_semantics=("parallel", "parallel"))
    # Only raise the scoped-VMEM limit when the chosen tiles actually need it
    # (normal configs stay under every chip's default limit).
    if vmem_need_bytes > 12 * 1024 * 1024:
        kwargs["vmem_limit_bytes"] = min(int(vmem_need_bytes * 1.5) + (1 << 20),
                                         100 * 1024 * 1024)
    return pltpu.CompilerParams(**kwargs)


def _outer_expand(plane_flat: jnp.ndarray, y_col: jnp.ndarray,
                  size: int) -> jnp.ndarray:
    """Return out[i, p] = y[i] * plane_flat[p] as a (size, plane_len) array."""
    plane_len = plane_flat.shape[0]
    bm, bp, need = _choose_tiles(size, plane_len)
    grid = (size // bm, plane_len // bp)

    return pl.pallas_call(
        _outer_kernel,
        out_shape=jax.ShapeDtypeStruct((size, plane_len), jnp.float32),
        grid_spec=pltpu.PrefetchScalarGridSpec(
            num_scalar_prefetch=0,
            grid=grid,
            in_specs=[
                pl.BlockSpec((bm, 1), lambda i, j: (i, 0)),   # y chunk (rows)
                pl.BlockSpec((1, bp), lambda i, j: (0, j)),   # plane chunk (lanes)
            ],
            out_specs=pl.BlockSpec((bm, bp), lambda i, j: (i, j)),
        ),
        compiler_params=_compiler_params(need),
        cost_estimate=pl.CostEstimate(
            flops=size * plane_len,
            transcendentals=0,
            bytes_accessed=4 * (size * plane_len + size + plane_len)),
    )(y_col, plane_flat.reshape(1, plane_len))


# ----------------------------- public API -------------------------------------


def sinusoidal_attenuator(size: int = 128, dimensions: int = 3) -> jnp.ndarray:
    """JAX/Pallas equivalent of SinusoidalAttenuator(size, dimensions).forward()."""
    if dimensions < 1:
        raise ValueError("dimensions must be >= 1")

    y = _make_profile(size)
    if dimensions == 1:
        return y

    y_col = y.reshape(size, 1)
    att_flat = y                                   # flattened current attenuator
    for _ in range(1, dimensions):
        att2d = _outer_expand(att_flat.reshape(-1), y_col, size)
        att_flat = att2d.reshape(-1)

    # Row-major contiguous reshape back to the module's (size,)*dimensions output.
    return att_flat.reshape((size,) * dimensions)


# ----------------------------- verification ----------------------------------


def _reference(size: int, dimensions: int) -> jnp.ndarray:
    """Pure-JAX port of SinusoidalAttenuator.make_attenuator for verification."""
    y = _make_profile(size)
    att = y
    for _ in range(1, dimensions):
        att = att[..., None] * y
    return att


if __name__ == "__main__":
    # The module takes no tensor inputs; the key only satisfies the
    # deterministic-input convention (the attenuator itself is deterministic).
    _ = jax.random.PRNGKey(0)

    size = 16

    # Primary: the module's default 3-D attenuator at small size.
    out3 = jax.block_until_ready(sinusoidal_attenuator(size=size, dimensions=3))
    ref3 = _reference(size, 3)
    assert out3.shape == (size, size, size), out3.shape
    assert out3.dtype == jnp.float32, out3.dtype
    assert jnp.allclose(out3, ref3, atol=1e-6, rtol=1e-6), "3-D mismatch vs reference"

    # 2-D path (single kernel call).
    out2 = jax.block_until_ready(sinusoidal_attenuator(size=size, dimensions=2))
    ref2 = _reference(size, 2)
    assert out2.shape == (size, size), out2.shape
    assert jnp.allclose(out2, ref2, atol=1e-6, rtol=1e-6), "2-D mismatch vs reference"

    # General n-D path (previously raised NotImplementedError).
    out4 = jax.block_until_ready(sinusoidal_attenuator(size=size, dimensions=4))
    ref4 = _reference(size, 4)
    assert out4.shape == (size,) * 4, out4.shape
    assert jnp.allclose(out4, ref4, atol=1e-6, rtol=1e-6), "4-D mismatch vs reference"

    print("KERNEL_OK")
</pallas_src>

<mosaic_0001>
module attributes {stable_mosaic.version = 11 : i64} {
  func.func @_outer_kernel(%arg0: i32, %arg1: i32, %arg2: memref<8x1xf32, #tpu.memory_space<vmem>>, %arg3: memref<1x16xf32, #tpu.memory_space<vmem>>, %arg4: memref<8x16xf32, #tpu.memory_space<vmem>>) attributes {dimension_semantics = [#tpu.dimension_semantics<parallel>, #tpu.dimension_semantics<parallel>], iteration_bounds = array<i64: 2, 1>, scalar_prefetch = 0 : i64, scratch_operands = 0 : i64, tpu.core_type = #tpu.core_type<tc>, window_params = [{transform_indices = @transform_0, window_bounds = array<i64: 8, 1>}, {transform_indices = @transform_1, window_bounds = array<i64: 1, 16>}, {transform_indices = @transform_2, window_bounds = array<i64: 8, 16>}]} {
    %c0 = arith.constant 0 : index
    %c0_0 = arith.constant 0 : index
    %0 = vector.load %arg2[%c0, %c0_0] : memref<8x1xf32, #tpu.memory_space<vmem>>, vector<8x1xf32>
    %c0_1 = arith.constant 0 : index
    %c0_2 = arith.constant 0 : index
    %1 = vector.load %arg3[%c0_1, %c0_2] : memref<1x16xf32, #tpu.memory_space<vmem>>, vector<1x16xf32>
    %2 = vector.broadcast %0 : vector<8x1xf32> to vector<8x16xf32>
    %3 = vector.broadcast %1 : vector<1x16xf32> to vector<8x16xf32>
    %4 = arith.mulf %2, %3 : vector<8x16xf32>
    %c0_3 = arith.constant 0 : index
    %c0_4 = arith.constant 0 : index
    %5 = vector.load %arg4[%c0_3, %c0_4] : memref<8x16xf32, #tpu.memory_space<vmem>>, vector<8x16xf32>
    tpu.vector_store %arg4[%c0_3, %c0_4], %4 {strides = array<i32>} : memref<8x16xf32, #tpu.memory_space<vmem>>, vector<8x16xf32>,
    return
  }
  func.func @transform_0(%arg0: i32, %arg1: i32) -> (i32, i32) {
    %c0_i32 = arith.constant 0 : i32
    %c0_i32_0 = arith.constant 0 : i32
    return %arg0, %c0_i32 : i32, i32
  }
  func.func @transform_1(%arg0: i32, %arg1: i32) -> (i32, i32) {
    %c0_i32 = arith.constant 0 : i32
    %c0_i32_0 = arith.constant 0 : i32
    return %c0_i32, %arg1 : i32, i32
  }
  func.func @transform_2(%arg0: i32, %arg1: i32) -> (i32, i32) {
    %c0_i32 = arith.constant 0 : i32
    return %arg0, %arg1 : i32, i32
  }
}

</mosaic_0001>

<bundles_post_ra>
// kernel: tpu_custom_call.1
= control target key start
LH: loop header
LB: loop body
LE: loop exit
PB: predicated region body
PF: predicated region fallthrough
CT: control target
= control target key end

     0   :  { %7 = vsyncpa [#allocation3], 0  ;;  %s560_s0 = inlined_call_operand.vmem [shape: f32[16,1], index: 0, kind: input, shape index: {}]   ;;  %s561_s1 = inlined_call_operand.vmem [shape: f32[1,16], index: 1, kind: input, shape index: {}]   ;;  %s562_s2 = inlined_call_operand.hbm [shape: f32[16,16], index: 2, kind: output, shape index: {}]  }
   0x1   :  { %9 = vsyncpa [#allocation3 + $0x1], 0  ;;  %s445_s9 = smov 0   ;;  %s447_s10 = smov 0  }
   0x2   :  { %s449_s11 = smov 0   ;;  %s451_s12 = smov 0  }
   0x3   :  { %s453_s13 = smov 0   ;;  %s455_s14 = smov 0  }
   0x4 LB: > { %s278_s15 = sadd.s32 4294967295, %s426_s14   ;;  %s279_s16 = sadd.s32 4294967294, %s426_s14   ;;  %s426_s14 = sphi %s455_s14, %s15_s14   ;;  %s422_s13 = sphi %s453_s13, %s569_s13   ;;  %s418_s12 = sphi %s451_s12, %s568_s12   ;;  %s414_s11 = sphi %s449_s11, %s567_s11   ;;  %s410_s10 = sphi %s447_s10, %s566_s10   ;;  %s406_s9 = sphi %s445_s9, %s565_s9  }
   0x5   : > { %s27_s17 = sadd.s32 1, %s422_s13  ;;  %s88_s18 = sadd.s32 1, %s414_s11 }
   0x6   : > { %p29_p0 = scmp.ge.s32.totalorder %s27_s17, 2  ;;  %p98_p1 = scmp.ne.s32.totalorder %s414_s11, %s410_s10 }
   0x7   : > { %p99_p2 = scmp.eq.s32.totalorder %s278_s15, 1  ;;  %p104_p3 = scmp.ne.s32.totalorder %s410_s10, %s406_s9 }
   0x8   : > { %s571_s17 = smov (%p29_p0, %s27_s17), 0  ;;  %p105_p5 = scmp.eq.s32.totalorder %s279_s16, 1 }
   0x9   : > { %p485_p4 = por %p99_p2, %p98_p1  ;;  %s83_s20 = ssub.s32 %s422_s13, %s571_s17 }
   0xa   : > { %p283_p6 = scmp.ge.s32.totalorder %s426_s14, 1  ;;  %p86_p7 = scmp.eq.s32.totalorder %s83_s20, 0 }
   0xb   : > { %p492_p8 = por %p105_p5, %p104_p3  ;;  %p136_p9 = scmp.lt.s32.totalorder %s426_s14, 3 }
   0xc   : > { %s498_s22 = scalar_select %p86_p7, %s414_s11, %s88_s18  }
   0xd   : > { %p137_p10 = pnand %p283_p6, %p136_p9 }
   0xe   : > { %p160_p11 = scmp.lt.s32.totalorder (!%p137_p10), %s418_s12, 1  ;;  %v428_v0 = vmov (!%p137_p10), 0   ;;  %s157_s28 = sand.u32 (!%p137_p10), 1, %s410_s10   ;;  %v286_v2 = vld [vmem:[%s561_s1] ss:$0 sm:$0xff] (!%p137_p10)  ;;  %vm181_vm0 = vcmask (!%p137_p10), 130048  }
   0xf   : > { %140 = sbr.rel (%p137_p10) target bundleno = 171 (0xab), region = 28  ;;  %347 = vset.pattern.permute.xlu0 (!%p137_p10), %v428_v0  ;;  %s284_s29 = sshll.u32 (!%p137_p10), %s157_s28, 3 }
  0x10   : > { %s288_s4 = sshll.u32 (!%p137_p10), %s418_s12, 7  ;;  %s159_s5 = scalar_lea.vmem (!%p137_p10), [#allocation2], %s284_s29 }
  0x11   : > { %s198_s6 = sshll.u32 (!%p137_p10), %s159_s5, 4  ;;  %s513_s15 = scalar_lea.hbm (!%p137_p10), %s562_s2, %s288_s4  ;;  %s515_s6 = int_to_ptr.vmem [resolvable:$true] %s198_s6 }
  0x12   : > { %s184_s16 = scalar_lea.sflag (!%p137_p10), [#allocation3], %s157_s28  ;;  %s348_s18 = scalar_lea.vmem (!%p137_p10), %s515_s6, 128 }
  0x13   : > { %p349_p12 = scmp.ne.s32.totalorder (!%p137_p10), %s515_s6, %s348_s18 }
  0x15   : > { %p350_p13 = pnand (!%p137_p10), %p349_p12, %p485_p4 }
  0x16   : > { %s161_s23 = scalar_select %p160_p11, %s418_s12, 1 }
  0x17   : > { %p351_p0 = pneg %p350_p13  ;;  %s429_s12 = smov [#allocation2]  }
  0x18   : > { %s285_s24 = sshll.u32 %s161_s23, 3  ;;  %s352_s20 = sshll.u32 %s429_s12, 4  ;;  %s353_s20 = int_to_ptr.vmem [resolvable:$false] %s352_s20 }
  0x19   : > { %s163_s27 = scalar_lea.vmem %s560_s0, %s285_s24  ;;  %s354_s23 = scalar_lea.vmem %s353_s20, 256 }
  0x1a   : > { %v167_v1 = vld [vmem:[%s163_s27] sm:$0xff]  ;;  %p355_p1 = scmp.lt.s32.totalorder %s515_s6, %s353_s20  ;;  %p356_p2 = scmp.lt.s32.totalorder %s354_s23, %s348_s18 }
  0x1b   : > { %171 = vperm.xlu0 %347, %v167_v1  }
  0x1c   : > { %p357_p3 = por %p356_p2, %p355_p1 }
  0x1e   : > { %p358_p5 = pnand %p357_p3, %p351_p0 }
  0x9a   : > { %v172_v3 = vpop.permute.xlu0 %171 }
  0x9b   : > { %v180_v4 = vmul.f32 %v286_v2, %v172_v3 }
  0x9d   : > { %182 = vst.msk [vmem:[%s159_s5] sm:$0xff] %vm181_vm0, %v180_v4 }
  0x9e   : > { %361 = shalt.err (!%p358_p5)
}
  0x9f   : > { %s362_s24 = scalar_lea.hbm %s513_s15, 128  ;;  %s366_s27 = scalar_lea.hbm %s562_s2, 256 }
  0xa0   : > { %p363_p6 = scmp.ne.s32.totalorder %s513_s15, %s362_s24  ;;  %p367_p10 = scmp.lt.u32.totalorder %s513_s15, %s562_s2 }
  0xa1   : > { %p368_p11 = scmp.lt.u32.totalorder %s366_s27, %s362_s24  ;;  %p370_p13 = scmp.lt.u32.totalorder %s362_s24, %s513_s15 }
  0xa2   : > { %p364_p7 = pnand %p363_p6, %p485_p4 }
  0xa3   : > { %p369_p12 = por %p368_p11, %p367_p10 }
  0xa4   : > { %p365_p9 = pneg %p364_p7 }
  0xa5   : > { %p371_p0 = por %p370_p13, %p369_p12 }
  0xa7   : > { %p372_p1 = pnand %p371_p0, %p365_p9 }
  0xa9   : > { %375 = shalt.err (!%p372_p1)
}
  0xaa   : > { %291 = dma.vmem_to_hbm [thread:$0]  (%p485_p4), %s515_s6, 128, %s513_s15, %s184_s16  }
  0xab PF: > { %p297_p2 = scmp.ge.s32.totalorder %s426_s14, 2  ;;  %s210_s30 = sand.u32 1, %s406_s9  }
  0xac   : > { %s211_s3 = scalar_lea.sflag [#allocation3], %s210_s30 }
  0xad   : > { %p294_p3 = pnand %p297_p2, %p492_p8 }
  0xaf   : > { %401 = dma.done.wait (!%p294_p3), %s211_s3, 128  }
  0xb0   : > { %403 = vsyncadd (!%p294_p3), %s211_s3, 4294967168  ;;  %s15_s14 = sadd.s32 1, %s426_s14   ;;  %s565_s9 = smov %s410_s10 }
  0xb1   : > { %p12_p5 = scmp.ge.s32.totalorder %s15_s14, 4   ;;  %s566_s10 = smov %s414_s11 }
  0xb2   : > { %s567_s11 = smov %s498_s22  ;;  %s568_s12 = smov %s422_s13 }
  0xb3   : > { %s569_s13 = smov %s571_s17  ;;  %14 = sbr.rel (!%p12_p5) target bundleno = 4 (0x4), region = 66 }
  0xba   :  { %216 = vsyncpa [#allocation3], 1 }
  0xbb   :  { %218 = vsyncpa [#allocation3 + $0x1], 1 }

</bundles_post_ra>
